<compile_context>
chip_gen: v7x
topology: tpu7x:2x2x1
jax: 0.10.0
libtpu: 0.0.40
codegen_flags: <defaults>
</compile_context>

<pallas_src>
import math
from functools import partial

import jax
import jax.numpy as jnp
from jax import lax
from jax.experimental import pallas as pl
from jax.experimental.pallas import tpu as pltpu

NORM_EPS = 1e-12  # matches torch.nn.functional.normalize default eps


def _arc_margin_kernel(x_ref, w_ref, inv_w_ref, label_ref, out_ref, *,
                       s, cos_m, sin_m, th, mm, easy_margin, ls_eps,
                       num_classes):
    # x rows are already unit-norm (wrapper); W rows are raw and their inverse
    # L2 norm (precomputed in the wrapper) is folded in after the matmul.
    x = x_ref[...]                                   # (tb, D)
    w = w_ref[...]                                   # (tc, D)
    xm = x.astype(w.dtype)

    # Contract on D without transposing W (MXU matmul, f32 accumulation).
    # TODO(synk): verify via pl.lower_as_mlir that this (1,1)-contraction does
    # not insert a per-tile vxpose; if it does, store W transposed at init.
    raw = lax.dot_general(xm, w, (((1,), (1,)), ((), ())),
                          preferred_element_type=jnp.float32)   # (tb, tc)
    cosine = raw * inv_w_ref[...]                    # (1, tc) lane broadcast

    # Margin math with `s` folded into the constants (drops one full-tile
    # scale pass).  sqrt(1 - cos^2) may NaN if |cos| rounds marginally above
    # 1, exactly like the PyTorch module; intentionally not clamped.
    sine = jnp.sqrt(1.0 - cosine * cosine)
    phi_s = cosine * (s * cos_m) - sine * (s * sin_m)           # = s * phi
    cos_s = cosine * s
    if easy_margin:
        phi_s = jnp.where(cosine > 0.0, phi_s, cos_s)
    else:
        phi_s = jnp.where(cosine > th, phi_s, cos_s - s * mm)

    # One-hot blend: compare local column iota against (label - col0); the
    # tile-wide int add is replaced by a (tb, 1) subtract.
    tb, tc = out_ref.shape
    col0 = pl.program_id(0) * tc                     # grid axis 0 == C tiles
    rel = label_ref[...] - col0                      # (tb, 1) int32
    col_ids = lax.broadcasted_iota(jnp.int32, (tb, tc), 1)
    hit = col_ids == rel                             # (tb, tc) bool

    if ls_eps > 0.0:
        one_hot = (1.0 - ls_eps) * hit.astype(jnp.float32) + ls_eps / num_classes
        out = one_hot * phi_s + (1.0 - one_hot) * cos_s
    else:
        out = jnp.where(hit, phi_s, cos_s)

    out_ref[...] = out.astype(out_ref.dtype)


def _round_up(v, m):
    return ((v + m - 1) // m) * m


def _vmem_capacity_bytes():
    try:
        return int(pltpu.get_tpu_info().vmem_capacity_bytes)
    except Exception:
        return 64 * 1024 * 1024   # conservative fallback (v7x-sized VMEM)


def arc_margin_product(x, weight, label, *, s=30.0, m=0.5, easy_margin=False,
                       ls_eps=0.0, tb=None, tc=None, weight_dtype=None,
                       out_dtype=jnp.float32, vmem_limit_bytes=None):
    """x: (B, D) f32, weight: (C, D) f32, label: (B,) int -> (B, C)."""
    B, D = x.shape
    C, D2 = weight.shape
    assert D == D2, "feature dims must match"

    # ---- generation-aware budgets -------------------------------------
    cap = _vmem_capacity_bytes()
    if cap >= 96 * 1024 * 1024:          # v5e / v6e: 128 MiB physical VMEM
        w_budget = 16 * 1024 * 1024      # per-buffer W tile budget
        vmem_cap = 100 * 1024 * 1024
    else:                                # v7x: 64 MiB per TensorCore
        w_budget = 8 * 1024 * 1024
        vmem_cap = 56 * 1024 * 1024      # headroom for compiler scratch

    w_bytes = 2 if weight_dtype == jnp.bfloat16 else 4

    # Tile sizes: tb multiple of 8 (f32 sublanes), tc multiple of 128 (lanes,
    # unmasked lane-dense stores), preferring 256 alignment for 2x256^2 MXUs.
    if tb is None:
        tb = min(_round_up(B, 8), 256)
    if tc is None:
        fit = (w_budget // (w_bytes * max(D, 1)) // 128) * 128
        if fit >= 256:
            fit = (fit // 256) * 256
        tc = max(128, min(_round_up(C, 128), max(fit, 128)))

    Bp = _round_up(B, tb)
    Cp = _round_up(C, tc)

    # ---- wrapper-side preprocessing (tiny vs. the C x D matmul) --------
    x = x.astype(jnp.float32)
    weight = weight.astype(jnp.float32)
    # 1/max(||x||, eps) == rsqrt(max(||x||^2, eps^2)) for real inputs.
    inv_x = lax.rsqrt(jnp.maximum(jnp.sum(x * x, axis=-1, keepdims=True),
                                  NORM_EPS * NORM_EPS))
    xn = x * inv_x                                               # (B, D)
    inv_w = lax.rsqrt(jnp.maximum(jnp.sum(weight * weight, axis=-1,
                                          keepdims=True),
                                  NORM_EPS * NORM_EPS)).reshape(1, C)

    w_in = weight.astype(weight_dtype) if weight_dtype is not None else weight

    xp = jnp.pad(xn, ((0, Bp - B), (0, 0))) if Bp != B else xn
    wp = jnp.pad(w_in, ((0, Cp - C), (0, 0))) if Cp != C else w_in
    iwp = jnp.pad(inv_w, ((0, 0), (0, Cp - C))) if Cp != C else inv_w
    lab = label.astype(jnp.int32)
    if Bp != B:
        lab = jnp.pad(lab, (0, Bp - B))
    label2d = lab.reshape(Bp, 1)

    # Outer axis = C tiles (W resident across the inner B loop), inner = B.
    grid = (Cp // tc, Bp // tb)

    # Raise the scoped VMEM limit only when the working set needs it, capped
    # per generation.
    if vmem_limit_bytes is None:
        est = 2 * (tb * D * 4 + tc * D * w_bytes + tb * tc * 4 + tc * 4 + tb * 4)
        need = int(est * 1.5)
        if need > 32 * 1024 * 1024:
            vmem_limit_bytes = min(need, vmem_cap)

    kernel = partial(
        _arc_margin_kernel,
        s=float(s), cos_m=math.cos(m), sin_m=math.sin(m),
        th=math.cos(math.pi - m), mm=math.sin(math.pi - m) * m,
        easy_margin=bool(easy_margin), ls_eps=float(ls_eps), num_classes=C)

    out = pl.pallas_call(
        kernel,
        out_shape=jax.ShapeDtypeStruct((Bp, Cp), out_dtype),
        grid_spec=pltpu.PrefetchScalarGridSpec(
            num_scalar_prefetch=0,
            grid=grid,
            in_specs=[
                pl.BlockSpec((tb, D), lambda j, i: (i, 0)),   # x (small, re-streamed)
                pl.BlockSpec((tc, D), lambda j, i: (j, 0)),   # W (resident per outer step)
                pl.BlockSpec((1, tc), lambda j, i: (0, j)),   # inv_w per-class scale
                pl.BlockSpec((tb, 1), lambda j, i: (i, 0)),   # labels
            ],
            out_specs=pl.BlockSpec((tb, tc), lambda j, i: (i, j)),
        ),
        compiler_params=pltpu.CompilerParams(
            dimension_semantics=("parallel", "arbitrary"),
            vmem_limit_bytes=vmem_limit_bytes),
    )(xp, wp, iwp, label2d)

    return out[:B, :C] if (Bp != B or Cp != C) else out


def _reference(x, weight, label, *, s=30.0, m=0.5, easy_margin=False, ls_eps=0.0):
    """Pure-JAX reference mirroring the PyTorch forward."""
    cos_m, sin_m = math.cos(m), math.sin(m)
    th, mm = math.cos(math.pi - m), math.sin(math.pi - m) * m
    xn = x / jnp.maximum(jnp.linalg.norm(x, axis=1, keepdims=True), NORM_EPS)
    wn = weight / jnp.maximum(jnp.linalg.norm(weight, axis=1, keepdims=True), NORM_EPS)
    cosine = xn @ wn.T
    sine = jnp.sqrt(1.0 - cosine ** 2)
    phi = cosine * cos_m - sine * sin_m
    if easy_margin:
        phi = jnp.where(cosine > 0.0, phi, cosine)
    else:
        phi = jnp.where(cosine > th, phi, cosine - mm)
    one_hot = jax.nn.one_hot(label, weight.shape[0], dtype=jnp.float32)
    if ls_eps > 0:
        one_hot = (1 - ls_eps) * one_hot + ls_eps / weight.shape[0]
    return (one_hot * phi + (1.0 - one_hot) * cosine) * s


if __name__ == "__main__":
    B = 16            # batch
    IN_FEATURES = 128
    OUT_FEATURES = 256

    key = jax.random.PRNGKey(0)
    kx, kw, kl = jax.random.split(key, 3)

    x = jax.random.normal(kx, (B, IN_FEATURES), dtype=jnp.float32)

    # Xavier-uniform init for weight (out_features, in_features), deterministic.
    bound = math.sqrt(6.0 / (IN_FEATURES + OUT_FEATURES))
    weight = jax.random.uniform(
        kw, (OUT_FEATURES, IN_FEATURES), dtype=jnp.float32,
        minval=-bound, maxval=bound)

    label = jax.random.randint(kl, (B,), 0, OUT_FEATURES, dtype=jnp.int32)

    # tb=8, tc=128 so the toy problem exercises a real (C-tile, B-tile) grid.
    out = arc_margin_product(x, weight, label, tb=8, tc=128)
    out = jax.block_until_ready(out)

    ref = _reference(x, weight, label)
    assert out.shape == (B, OUT_FEATURES)
    assert jnp.allclose(out, ref, atol=1e-4, rtol=1e-4), "mismatch vs reference"

    print("KERNEL_OK")
</pallas_src>

<mosaic_0001>
module attributes {stable_mosaic.version = 11 : i64} {
  func.func @_arc_margin_kernel(%arg0: i32, %arg1: i32, %arg2: memref<8x128xf32, #tpu.memory_space<vmem>>, %arg3: memref<128x128xf32, #tpu.memory_space<vmem>>, %arg4: memref<1x128xf32, #tpu.memory_space<vmem>>, %arg5: memref<8x1xi32, #tpu.memory_space<vmem>>, %arg6: memref<8x128xf32, #tpu.memory_space<vmem>>) attributes {dimension_semantics = [#tpu.dimension_semantics<parallel>, #tpu.dimension_semantics<arbitrary>], iteration_bounds = array<i64: 2, 2>, scalar_prefetch = 0 : i64, scratch_operands = 0 : i64, tpu.core_type = #tpu.core_type<tc>, window_params = [{transform_indices = @transform_0, window_bounds = array<i64: 8, 128>}, {transform_indices = @transform_1, window_bounds = array<i64: 128, 128>}, {transform_indices = @transform_2, window_bounds = array<i64: 1, 128>}, {transform_indices = @transform_3, window_bounds = array<i64: 8, 1>}, {transform_indices = @transform_4, window_bounds = array<i64: 8, 128>}]} {
    %c0 = arith.constant 0 : index
    %c0_0 = arith.constant 0 : index
    %0 = vector.load %arg2[%c0, %c0_0] : memref<8x128xf32, #tpu.memory_space<vmem>>, vector<8x128xf32>
    %c0_1 = arith.constant 0 : index
    %c0_2 = arith.constant 0 : index
    %1 = vector.load %arg3[%c0_1, %c0_2] : memref<128x128xf32, #tpu.memory_space<vmem>>, vector<128x128xf32>
    %cst = arith.constant dense<0.000000e+00> : vector<8x128xf32>
    %2 = tpu.matmul %0, %1, %cst {dimension_numbers = #tpu.dot_dimension_numbers<[1], [1], [0], [0], [0, 0, 1, 0], [], []>} : vector<8x128xf32>, vector<128x128xf32>, vector<8x128xf32> -> vector<8x128xf32>
    %c0_3 = arith.constant 0 : index
    %c0_4 = arith.constant 0 : index
    %3 = vector.load %arg4[%c0_3, %c0_4] : memref<1x128xf32, #tpu.memory_space<vmem>>, vector<1x128xf32>
    %4 = vector.broadcast %3 : vector<1x128xf32> to vector<8x128xf32>
    %5 = arith.mulf %2, %4 : vector<8x128xf32>
    %6 = arith.mulf %5, %5 : vector<8x128xf32>
    %cst_5 = arith.constant 1.000000e+00 : f32
    %7 = vector.broadcast %cst_5 : f32 to vector<8x128xf32>
    %8 = arith.subf %7, %6 : vector<8x128xf32>
    %9 = math.sqrt %8 : vector<8x128xf32>
    %cst_6 = arith.constant 26.3274765 : f32
    %10 = vector.broadcast %cst_6 : f32 to vector<8x128xf32>
    %11 = arith.mulf %5, %10 : vector<8x128xf32>
    %cst_7 = arith.constant 14.3827658 : f32
    %12 = vector.broadcast %cst_7 : f32 to vector<8x128xf32>
    %13 = arith.mulf %9, %12 : vector<8x128xf32>
    %14 = arith.subf %11, %13 : vector<8x128xf32>
    %cst_8 = arith.constant 3.000000e+01 : f32
    %15 = vector.broadcast %cst_8 : f32 to vector<8x128xf32>
    %16 = arith.mulf %5, %15 : vector<8x128xf32>
    %cst_9 = arith.constant -0.87758255 : f32
    %17 = vector.broadcast %cst_9 : f32 to vector<8x128xf32>
    %18 = arith.cmpf ogt, %5, %17 : vector<8x128xf32>
    %cst_10 = arith.constant 7.19138288 : f32
    %19 = vector.broadcast %cst_10 : f32 to vector<8x128xf32>
    %20 = arith.subf %16, %19 : vector<8x128xf32>
    %21 = arith.select %18, %14, %20 : vector<8x128xi1>, vector<8x128xf32>
    %c128_i32 = arith.constant 128 : i32
    %22 = arith.muli %arg0, %c128_i32 : i32
    %c0_11 = arith.constant 0 : index
    %c0_12 = arith.constant 0 : index
    %23 = vector.load %arg5[%c0_11, %c0_12] : memref<8x1xi32, #tpu.memory_space<vmem>>, vector<8x1xi32>
    %24 = vector.broadcast %22 : i32 to vector<8x1xi32>
    %25 = arith.subi %23, %24 : vector<8x1xi32>
    %26 = tpu.iota {dimensions = array<i32: 1>} : vector<8x128xi32>
    %27 = vector.broadcast %25 : vector<8x1xi32> to vector<8x128xi32>
    %28 = arith.cmpi eq, %26, %27 : vector<8x128xi32>
    %29 = arith.select %28, %21, %16 : vector<8x128xi1>, vector<8x128xf32>
    %c0_13 = arith.constant 0 : index
    %c0_14 = arith.constant 0 : index
    %30 = vector.load %arg6[%c0_13, %c0_14] : memref<8x128xf32, #tpu.memory_space<vmem>>, vector<8x128xf32>
    tpu.vector_store %arg6[%c0_13, %c0_14], %29 {strides = array<i32>} : memref<8x128xf32, #tpu.memory_space<vmem>>, vector<8x128xf32>,
    return
  }
  func.func @transform_0(%arg0: i32, %arg1: i32) -> (i32, i32) {
    %c0_i32 = arith.constant 0 : i32
    %c0_i32_0 = arith.constant 0 : i32
    return %arg1, %c0_i32 : i32, i32
  }
  func.func @transform_1(%arg0: i32, %arg1: i32) -> (i32, i32) {
    %c0_i32 = arith.constant 0 : i32
    %c0_i32_0 = arith.constant 0 : i32
    return %arg0, %c0_i32 : i32, i32
  }
  func.func @transform_2(%arg0: i32, %arg1: i32) -> (i32, i32) {
    %c0_i32 = arith.constant 0 : i32
    %c0_i32_0 = arith.constant 0 : i32
    return %c0_i32, %arg0 : i32, i32
  }
  func.func @transform_3(%arg0: i32, %arg1: i32) -> (i32, i32) {
    %c0_i32 = arith.constant 0 : i32
    %c0_i32_0 = arith.constant 0 : i32
    return %arg1, %c0_i32 : i32, i32
  }
  func.func @transform_4(%arg0: i32, %arg1: i32) -> (i32, i32) {
    %c0_i32 = arith.constant 0 : i32
    return %arg1, %arg0 : i32, i32
  }
}

</mosaic_0001>

<bundles_post_ra>
// kernel: tpu_custom_call.1
= control target key start
LH: loop header
LB: loop body
LE: loop exit
PB: predicated region body
PF: predicated region fallthrough
CT: control target
= control target key end

     0   :  { %9 = vsyncpa [#allocation3], 0  ;;  %s1187_s0 = inlined_call_operand.vmem [shape: f32[16,128], index: 0, kind: input, shape index: {}]   ;;  %s1188_s1 = inlined_call_operand.hbm [shape: f32[256,128], index: 1, kind: input, shape index: {}]   ;;  %s1189_s2 = inlined_call_operand.vmem [shape: f32[1,256], index: 2, kind: input, shape index: {}]   ;;  %s1190_s3 = inlined_call_operand.vmem [shape: s32[16,1], index: 3, kind: input, shape index: {}]   ;;  %s1191_s4 = inlined_call_operand.hbm [shape: f32[16,256], index: 4, kind: output, shape index: {}]  }
   0x1   :  { %11 = vsyncpa [#allocation3 + $0x1], 0 }
   0x2   :  { %12 = vsyncpa [#allocation4], 0 }
   0x3   :  { %14 = vsyncpa [#allocation4 + $0x1], 0  ;;  %s929_s15 = smov 0   ;;  %s931_s16 = smov 0  }
   0x4   :  { %s933_s17 = smov 0   ;;  %s935_s18 = smov 0  }
   0x5   :  { %s937_s19 = smov 0   ;;  %s939_s20 = smov 0  }
   0x6   :  { %s941_s21 = smov 0   ;;  %s943_s22 = smov 0  }
   0x7   :  { %s945_s23 = smov 0   ;;  %s947_s24 = smov 0  }
   0x8   :  { %s949_s25 = smov 0  }
   0x9 LB: > { %s534_s26 = sadd.s32 4294967295, %s894_s25   ;;  %s535_s27 = sadd.s32 4294967294, %s894_s25   ;;  %s894_s25 = sphi %s949_s25, %s20_s25   ;;  %s890_s24 = sphi %s947_s24, %s1216_s24   ;;  %s886_s23 = sphi %s945_s23, %s1215_s23   ;;  %s882_s22 = sphi %s943_s22, %s1214_s22   ;;  %s878_s21 = sphi %s941_s21, %s1213_s21   ;;  %s874_s20 = sphi %s939_s20, %s1212_s20   ;;  %s870_s19 = sphi %s937_s19, %s1211_s19   ;;  %s866_s18 = sphi %s935_s18, %s1210_s18   ;;  %s862_s17 = sphi %s933_s17, %s1209_s17   ;;  %s858_s16 = sphi %s931_s16, %s1208_s16   ;;  %s854_s15 = sphi %s929_s15, %s1207_s15  }
   0xa   : > { %s29_s28 = sadd.s32 1, %s886_s23  ;;  %s32_s29 = sadd.s32 1, %s890_s24 }
   0xb   : > { %p30_p0 = scmp.ge.s32.totalorder %s29_s28, 2  ;;  %s65_s30 = sadd.s32 1, %s874_s20 }
   0xc   : > { %p72_p1 = scmp.ne.s32.totalorder %s874_s20, %s870_s19  ;;  %p73_p2 = scmp.eq.s32.totalorder %s894_s25, 0 }
   0xd   : > { %s1218_s28 = smov (%p30_p0, %s29_s28), 0  ;;  %s1220_s29 = smov (!%p30_p0, %s32_s29), %s890_s24 }
   0xe   : > { %1195 = sst [smem:[#allocation8_spill]] %s1218_s28  ;;  %p993_p3 = por %p73_p2, %p72_p1 }
   0xf   : > { %p78_p4 = scmp.ne.s32.totalorder %s870_s19, %s866_s18  ;;  %p34_p5 = scmp.ge.s32.totalorder %s1220_s29, 2 }
  0x10   : > { %p79_p6 = scmp.eq.s32.totalorder %s534_s26, 0  ;;  %s140_s6 = ssub.s32 %s886_s23, %s1218_s28 }
  0x11   : > { %s145_s7 = sadd.s32 1, %s862_s17  ;;  %s1222_s29 = smov (%p34_p5, %s1220_s29), 0 }
  0x12   : > { %1197 = sst [smem:[#allocation9_spill]] %s1222_s29  ;;  %p1003_p7 = por %p79_p6, %p78_p4 }
  0x13   : > { %p155_p8 = scmp.ne.s32.totalorder %s862_s17, %s858_s16  ;;  %s62_s9 = ssub.s32 %s890_s24, %s1222_s29 }
  0x14   : > { %p156_p9 = scmp.eq.s32.totalorder %s534_s26, 3  ;;  %p63_p10 = scmp.eq.s32.totalorder %s62_s9, 0 }
  0x15   : > { %s142_s10 = sor.u32 %s140_s6, %s62_s9  ;;  %p161_p13 = scmp.ne.s32.totalorder %s858_s16, %s854_s15 }
  0x16   : > { %p143_p11 = scmp.eq.s32.totalorder %s142_s10, 0  ;;  %p1011_p12 = por %p156_p9, %p155_p8 }
  0x17   : > { %s1016_s12 = scalar_select %p63_p10, %s874_s20, %s65_s30  }
  0x18   : > { %s1199_s11 = scalar_select %p1011_p12, 1, 0 }
  0x19   : > { %s1019_s13 = scalar_select %p143_p11, %s862_s17, %s145_s7  }
  0x1a   : > { %p162_p0 = scmp.eq.s32.totalorder %s535_s27, 3  ;;  %p643_p1 = scmp.lt.s32.totalorder %s894_s25, 4 }
  0x1b   : > { %s189_s18 = sand.u32 1, %s874_s20   ;;  %s554_s6 = sshll.u32 %s890_s24, 11 }
  0x1c   : > { %p1024_p2 = por %p162_p0, %p161_p13  ;;  %s538_s26 = sshll.u32 %s189_s18, 7 }
  0x1d   : > { %s1033_s29 = scalar_lea.hbm %s1188_s1, %s554_s6  ;;  %s193_s30 = scalar_lea.vmem [#allocation2], %s538_s26 }
  0x1e   : > { %s1200_s14 = scalar_select %p1024_p2, 1, 0 }
  0x1f   : > { %s200_s7 = sshll.u32 %s193_s30, 4  ;;  %p1039_p4 = pnand %p643_p1, %p993_p3  ;;  %s1035_s7 = int_to_ptr.vmem [resolvable:$true] %s200_s7 }
  0x20   : > { %s1044_s28 = scalar_lea.sflag [#allocation3], %s189_s18  ;;  %s742_s6 = scalar_lea.hbm %s1033_s29, 2048 }
  0x21   : > { %p743_p6 = scmp.ne.s32.totalorder %s1033_s29, %s742_s6  ;;  %p744_p8 = pneg %p1039_p4 }
  0x22   : > { %s747_s5 = scalar_lea.hbm %s1188_s1, 4096  ;;  %p748_p3 = scmp.lt.u32.totalorder %s1033_s29, %s1188_s1 }
  0x23   : > { %p745_p9 = pnand %p744_p8, %p743_p6  ;;  %p749_p11 = scmp.lt.u32.totalorder %s747_s5, %s742_s6 }
  0x24   : > { %p751_p0 = scmp.lt.u32.totalorder %s742_s6, %s1033_s29 }
  0x25   : > { %p746_p10 = pneg %p745_p9  ;;  %p750_p13 = por %p749_p11, %p748_p3 }
  0x27   : > { %p752_p1 = por %p751_p0, %p750_p13 }
  0x29   : > { %p753_p5 = pnand %p752_p1, %p746_p10 }
  0x2b   : > { %756 = shalt.err (!%p753_p5)
}
  0x2c   : > { %s757_s18 = scalar_lea.vmem %s1035_s7, 2048  ;;  %s896_s26 = smov [#allocation2]  }
  0x2d   : > { %p758_p6 = scmp.ne.s32.totalorder %s1035_s7, %s757_s18  ;;  %s762_s9 = sshll.u32 %s896_s26, 4  ;;  %s763_s9 = int_to_ptr.vmem [resolvable:$false] %s762_s9 }
  0x2e   : > { %s764_s10 = scalar_lea.vmem %s763_s9, 4096  ;;  %p765_p12 = scmp.lt.s32.totalorder %s1035_s7, %s763_s9 }
  0x2f   : > { %p760_p9 = pnand %p758_p6, %p744_p8  ;;  %p766_p3 = scmp.lt.s32.totalorder %s764_s10, %s757_s18 }
  0x31   : > { %p761_p2 = pneg %p760_p9  ;;  %p767_p11 = por %p766_p3, %p765_p12 }
  0x33   : > { %p768_p13 = pnand %p767_p11, %p761_p2 }
  0x35   : > { %771 = shalt.err (!%p768_p13)
}
  0x36   : > { %s897_s6 = smov 128   ;;  %s898_s5 = smov 8  }
  0x37   : > { %638 = dma.hbm_to_vmem [thread:$0]  (!%p1039_p4), %s1033_s29, 2048, %s1035_s7, %s1044_s28, %s897_s6, %s897_s6, %s898_s5  }
  0x38   : > { %p221_p5 = scmp.lt.s32.totalorder %s894_s25, 5  ;;  %p1202_p8 = scmp.ge.s32.totalorder %s894_s25, 1 }
  0x3a   : > { %p222_p10 = pnand %p1202_p8, %p221_p5 }
  0x3b   : > { %s227_s30 = sand.u32 (!%p222_p10), 1, %s870_s19  }
  0x3c   : > { %225 = sbr.rel (%p222_p10) target bundleno = 388 (0x184), region = 36  ;;  %s542_s18 = sshll.u32 (!%p222_p10), %s227_s30, 7 }
  0x3d   : > { %s228_s26 = scalar_lea.sflag (!%p222_p10), [#allocation3], %s227_s30  ;;  %s1076_s9 = scalar_lea.vmem (!%p222_p10), [#allocation2], %s542_s18 }
  0x43   : > { %845 = dma.done.wait (%p1003_p7), %s228_s26, 2048  }
  0x44   : > { %847 = vsyncadd (%p1003_p7), %s228_s26, 4294965248  ;;  %p267_p12 = scmp.lt.s32.totalorder %s878_s21, 1  ;;  %v899_v0 = vmov 0.0|0.0   ;;  %vm900_vm0 = vmmov 0   ;;  %v901_v1 = vmov 0.0   ;;  %v902_v2 = vmov 0  }
  0x45   : > { %607 = vmatprep.subr.bf16.mxu0 %v899_v0  ;;  %604 = vmatprep.mubr.msk.f32.mxu0 %vm900_vm0, %v901_v1  ;;  %v280_v3 = vld [vmem:[%s1076_s9] sm:$0xff]  ;;  %v281_v4 = vld [vmem:[%s1076_s9 + $0x8] sm:$0xff]  ;;  %s548_s29 = sshll.u32 %s882_s22, 7  ;;  %v282_v7 = vld [vmem:[%s1076_s9 + $0x10] sm:$0xff]  ;;  %p272_p7 = scmp.lt.s32.totalorder %s882_s22, 1  ;;  %v394_v37 = vlaneseq }
  0x46   : > { %739 = vset.pattern.permute.xlu0 %v902_v2  ;;  %s1084_s28 = scalar_select %p267_p12, %s878_s21, 1  ;;  %v608_v5 = vpack.c.bf16 %v281_v4, %v280_v3  ;;  %v392_v6 = vstv %s548_s29  ;;  %v283_v8 = vld [vmem:[%s1076_s9 + $0x18] sm:$0xff]  ;;  %v284_v12 = vld [vmem:[%s1076_s9 + $0x20] sm:$0xff]  ;;  %v285_v13 = vld [vmem:[%s1076_s9 + $0x28] sm:$0xff] }
  0x47   : > { %v611_v11 = vpack.c.bf16 %v283_v8, %v282_v7  ;;  %v614_v14 = vpack.c.bf16 %v285_v13, %v284_v12  ;;  %v286_v15 = vld [vmem:[%s1076_s9 + $0x30] sm:$0xff]  ;;  %v287_v16 = vld [vmem:[%s1076_s9 + $0x38] sm:$0xff]  ;;  %v288_v18 = vld [vmem:[%s1076_s9 + $0x40] sm:$0xff]  ;;  %s273_s18 = scalar_select %p272_p7, %s882_s22, 1  ;;  %v395_v41 = vand.u32 127, %v394_v37 }
  0x48   : > { %s544_s8 = sshll.u32 %s1084_s28, 3  ;;  %609 = vmatpush3.bf16.xpose.msra.mxu0 %v608_v5  ;;  %v617_v17 = vpack.c.bf16 %v287_v16, %v286_v15  ;;  %v289_v19 = vld [vmem:[%s1076_s9 + $0x48] sm:$0xff]  ;;  %v290_v21 = vld [vmem:[%s1076_s9 + $0x50] sm:$0xff]  ;;  %v291_v22 = vld [vmem:[%s1076_s9 + $0x58] sm:$0xff]  ;;  %p1203_p4 = scmp.ne.s32.totalorder %s1199_s11, 0 }
  0x49   : > { %s278_s10 = scalar_lea.vmem %s1190_s3, %s544_s8  ;;  %610 = vmatprep.subr.bf16.mxu0 %v899_v0  ;;  %v620_v20 = vpack.c.bf16 %v289_v19, %v288_v18  ;;  %v623_v23 = vpack.c.bf16 %v291_v22, %v290_v21  ;;  %v292_v24 = vld [vmem:[%s1076_s9 + $0x60] sm:$0xff]  ;;  %v293_v25 = vld [vmem:[%s1076_s9 + $0x68] sm:$0xff]  ;;  %v294_v27 = vld [vmem:[%s1076_s9 + $0x70] sm:$0xff]  ;;  %s270_s30 = scalar_lea.vmem %s1187_s0, %s544_s8 }
  0x4a   : > { %v391_v9 = vld [vmem:[%s278_s10] sm:$0xff]  ;;  %v626_v26 = vpack.c.bf16 %v293_v25, %v292_v24  ;;  %v295_v28 = vld [vmem:[%s1076_s9 + $0x78] sm:$0xff]  ;;  %s274_s7 = scalar_lea.vmem %s1189_s2, %s273_s18  ;;  %s264_s9 = sand.u32 1, %s858_s16  }
  0x4b   : > { %v393_v10 = vsub.s32 %v391_v9, %v392_v6  ;;  %v629_v29 = vpack.c.bf16 %v295_v28, %v294_v27  ;;  %v279_v30 = vld [vmem:[%s270_s30] sm:$0xff]  ;;  %s543_s28 = sshll.u32 %s264_s9, 3  ;;  %s550_s8 = sshll.u32 %s878_s21, 1 }
  0x4c   : > { %v546_v31 = vld [vmem:[%s274_s7] ss:$0 sm:$0xff]  ;;  %s414_s27 = sadd.s32 %s882_s22, %s550_s8  ;;  %s266_s6 = scalar_lea.vmem [#allocation5], %s543_s28 }
  0x4d   : > { %397 = vperm.xlu0 %739, %v393_v10   ;;  %s551_s10 = sshll.u32 %s414_s27, 7  ;;  %s418_s5 = sshll.u32 %s266_s6, 4  ;;  %s1127_s5 = int_to_ptr.vmem [resolvable:$true] %s418_s5 }
  0x4e   : > { %s1125_s18 = scalar_lea.hbm %s1191_s4, %s551_s10  ;;  %s403_s22 = scalar_lea.sflag [#allocation4], %s264_s9 }
  0x4f   : > { %s772_s26 = scalar_lea.vmem %s1127_s5, 128  ;;  %s903_s29 = smov [#allocation5]  }
  0x50   : > { %612 = vmatpush3.bf16.xpose.msra.mxu0 %v611_v11  ;;  %p773_p2 = scmp.ne.s32.totalorder %s1127_s5, %s772_s26  ;;  %s776_s7 = sshll.u32 %s903_s29, 4  ;;  %s777_s7 = int_to_ptr.vmem [resolvable:$false] %s776_s7 }
  0x51   : > { %613 = vmatprep.subr.bf16.mxu0 %v899_v0  ;;  %s778_s28 = scalar_lea.vmem %s777_s7, 256  ;;  %p779_p6 = scmp.lt.s32.totalorder %s1127_s5, %s777_s7 }
  0x52   : > { %p774_p0 = pnand %p773_p2, %p1203_p4  ;;  %p780_p9 = scmp.lt.s32.totalorder %s778_s28, %s772_s26 }
  0x54   : > { %p775_p1 = pneg %p774_p0  ;;  %p781_p3 = por %p780_p9, %p779_p6 }
  0x56   : > { %p782_p11 = pnand %p781_p3, %p775_p1 }
  0x58   : > { %615 = vmatpush3.bf16.xpose.msra.mxu0 %v614_v14 }
  0x59   : > { %616 = vmatprep.subr.bf16.mxu0 %v899_v0 }
  0x60   : > { %618 = vmatpush3.bf16.xpose.msra.mxu0 %v617_v17 }
  0x61   : > { %619 = vmatprep.subr.bf16.mxu0 %v899_v0 }
  0x68   : > { %621 = vmatpush3.bf16.xpose.msra.mxu0 %v620_v20 }
  0x69   : > { %622 = vmatprep.subr.bf16.mxu0 %v899_v0 }
  0x70   : > { %624 = vmatpush3.bf16.xpose.msra.mxu0 %v623_v23 }
  0x71   : > { %625 = vmatprep.subr.bf16.mxu0 %v899_v0 }
  0x78   : > { %627 = vmatpush3.bf16.xpose.msra.mxu0 %v626_v26 }
  0x79   : > { %628 = vmatprep.subr.bf16.mxu0 %v899_v0 }
  0x80   : > { %630 = vmatpush3.bf16.xpose.msra.mxu0 %v629_v29 }
  0x87   : > { %605 = vmatmul.mubr.f32.vlgmr.msra.gmra.mrb[0].mxu0 %v279_v30 }
  0xcc   : > { %v398_v44 = vpop.permute.xlu0 %397 }
  0xcd   : > { %vm399_vm3 = vcmp.eq.s32.totalorder %v395_v41, %v398_v44 }
 0x15a   : > { %v362_v32 = vpop.f32.mrb[0].mxu0 }
 0x15b   : > { %v373_v33 = vmul.f32 %v546_v31, %v362_v32  ;;  %v606_v34 = vpop.f32.mrb[1].mxu0 }
 0x15d   : > { %v374_v35 = vmul.f32 %v373_v33, %v373_v33  ;;  %v386_v43 = vmul.f32 30.0, %v373_v33  ;;  %v383_v46 = vmul.f32 26.327477, %v373_v33  ;;  %vm387_vm4 = vcmp.gt.f32.partialorder %v373_v33, -0.87758255 }
 0x15f   : > { %v375_v36 = vsub.f32 1.0, %v374_v35  ;;  %v547_v49 = vadd.f32 -7.191383, %v386_v43 }
 0x161   : > { %740 = vrsqrt.f32 %v375_v36  ;;  %vm378_vm1 = vcmp.eq.f32.partialorder %v375_v36, inf  ;;  %v381_v40 = vand.u32 2147483648, %v375_v36  ;;  %vm380_vm2 = vcmp.eq.f32.partialorder %v375_v36, 0.0 }
 0x16b   : > { %v741_v38 = vpop.eup %740 }
 0x16c   : > { %v377_v39 = vmul.f32 %v741_v38, %v375_v36 }
 0x16e   : > { %v379_v42 = vsel %vm378_vm1, %v375_v36, %v377_v39 }
 0x16f   : > { %v382_v45 = vsel %vm380_vm2, %v381_v40, %v379_v42 }
 0x170   : > { %v384_v47 = vmul.f32 14.382766, %v382_v45 }
 0x172   : > { %v385_v48 = vsub.f32 %v383_v46, %v384_v47 }
 0x174   : > { %v389_v50 = vsel %vm387_vm4, %v385_v48, %v547_v49 }
 0x175   : > { %v400_v51 = vsel %vm399_vm3, %v389_v50, %v386_v43 }
 0x176   : > { %401 = vst [vmem:[%s266_s6] sm:$0xff] %v400_v51 }
 0x177   : > { %785 = shalt.err (!%p782_p11)
}
 0x178   : > { %s786_s9 = scalar_lea.hbm %s1125_s18, 128  ;;  %s790_s10 = scalar_lea.hbm %s1191_s4, 512 }
 0x179   : > { %p787_p13 = scmp.ne.s32.totalorder %s1125_s18, %s786_s9  ;;  %p791_p10 = scmp.lt.u32.totalorder %s1125_s18, %s1191_s4 }
 0x17a   : > { %p792_p12 = scmp.lt.u32.totalorder %s790_s10, %s786_s9  ;;  %p794_p2 = scmp.lt.u32.totalorder %s786_s9, %s1125_s18 }
 0x17b   : > { %p788_p5 = pnand %p787_p13, %p1203_p4 }
 0x17c   : > { %p793_p7 = por %p792_p12, %p791_p10 }
 0x17d   : > { %p789_p8 = pneg %p788_p5 }
 0x17e   : > { %p795_p0 = por %p794_p2, %p793_p7 }
 0x180   : > { %p796_p1 = pnand %p795_p0, %p789_p8 }
 0x182   : > { %799 = shalt.err (!%p796_p1)
}
 0x183   : > { %633 = dma.vmem_to_hbm [thread:$0]  (%p1203_p4), %s1127_s5, 128, %s1125_s18, %s403_s22  }
 0x184 PF: > { %p644_p6 = scmp.ge.s32.totalorder %s894_s25, 2  ;;  %s430_s30 = sand.u32 1, %s854_s15  }
 0x185   : > { %p1204_p9 = scmp.ne.s32.totalorder %s1200_s14, 0  ;;  %s431_s26 = scalar_lea.sflag [#allocation4], %s430_s30 }
 0x187   : > { %p640_p3 = pnand %p644_p6, %p1204_p9 }
 0x189   : > { %849 = dma.done.wait (!%p640_p3), %s431_s26, 128  }
 0x18a   : > { %851 = vsyncadd (!%p640_p3), %s431_s26, 4294967168  ;;  %s20_s25 = sadd.s32 1, %s894_s25   ;;  %s1205_s11 = sld [smem:[#allocation8_spill]] }
 0x18b   : > { %p17_p11 = scmp.ge.s32.totalorder %s20_s25, 6   ;;  %s1206_s5 = sld [smem:[#allocation9_spill]] }
 0x18c   : > { %s1207_s15 = smov %s858_s16  ;;  %s1208_s16 = smov %s862_s17 }
 0x18d   : > { %s1209_s17 = smov %s1019_s13  ;;  %s1210_s18 = smov %s870_s19 }
 0x18e   : > { %s1211_s19 = smov %s874_s20  ;;  %s1212_s20 = smov %s1016_s12 }
 0x18f   : > { %s1213_s21 = smov %s886_s23  ;;  %s1214_s22 = smov %s890_s24 }
 0x190   : > { %s1215_s23 = smov %s1205_s11  ;;  %19 = sbr.rel (!%p17_p11) target bundleno = 9 (0x9), region = 90 }
 0x191   : > { %s1216_s24 = smov %s1206_s5 }
 0x197   :  { %436 = vsyncpa [#allocation3], 1 }
 0x198   :  { %438 = vsyncpa [#allocation3 + $0x1], 1 }
 0x199   :  { %439 = vsyncpa [#allocation4], 1 }
 0x19a   :  { %441 = vsyncpa [#allocation4 + $0x1], 1 }

</bundles_post_ra>
